<compile_context>
chip_gen: v5e
topology: v5e:2x2
jax: 0.10.0
libtpu: 0.0.40
codegen_flags: <defaults>
</compile_context>

<pallas_src>
import functools

import jax
import jax.numpy as jnp
from jax.experimental import pallas as pl
from jax.experimental.pallas import tpu as pltpu


def _patch_merge_kernel(xe_ref, xo_ref, wt_ref, wb_ref, bias_ref, o_ref, *, eps, tr):
    """Fused 2x2 merge + LayerNorm + Linear(4C->2C) for TR row-pair slabs.

    xe_ref, xo_ref : (TR, Wo, 2C) even / odd image rows of TR row pairs
                     (last dim is (woff, c): [x0|x2] for even rows, [x1|x3] for odd)
    wt_ref, wb_ref : (2C, N) gamma-folded reduction-weight halves
    bias_ref       : (1, N)  beta @ W^T
    o_ref          : (TR, Wo, N)
    """
    xe = xe_ref[...].astype(jnp.float32)
    xo = xo_ref[...].astype(jnp.float32)
    k_inv = 1.0 / (xe.shape[-1] + xo.shape[-1])          # 1 / 4C

    # LayerNorm statistics over all 4C merged channels (one-pass variance).
    s1 = jnp.sum(xe, axis=-1, keepdims=True) + jnp.sum(xo, axis=-1, keepdims=True)
    s2 = jnp.sum(xe * xe, axis=-1, keepdims=True) + jnp.sum(xo * xo, axis=-1, keepdims=True)
    mean = s1 * k_inv
    var = s2 * k_inv - mean * mean
    inv = jax.lax.rsqrt(var + eps)

    cdt = wt_ref.dtype                                    # matmul operand dtype (bf16/f32)
    xne = ((xe - mean) * inv).astype(cdt)                 # gamma/beta live in W / bias
    xno = ((xo - mean) * inv).astype(cdt)

    wt = wt_ref[...]
    wb = wb_ref[...]
    bias = bias_ref[...].astype(jnp.float32)

    # Per-slab matmuls, static unroll.  The MXU has large slack in this
    # memory-bound kernel, so small matmuls are fine and this avoids the sublane
    # relayout a (TR, Wo, 2C) -> (TR*Wo, 2C) reshape would need when Wo % 8 != 0.
    for r in range(tr):
        acc = jnp.dot(xne[r], wt, preferred_element_type=jnp.float32)
        acc = acc + jnp.dot(xno[r], wb, preferred_element_type=jnp.float32)
        o_ref[r] = (acc + bias).astype(o_ref.dtype)


def _fused_patch_merge(x5, w_top, w_bot, bias, *, eps,
                       target_rows=512, unroll_cap=32,
                       vmem_limit_bytes=48 * 1024 * 1024):
    """Returns (R, Wo, N) with y = LayerNorm(merge(x)) @ W' + bias, R = B*Ho.

    x5    : (R, 2, Wo, 2C) padded image viewed as row pairs (free reshape)
    w_top : (2C, N) gamma-folded weight rows for the even image row ([x0|x2])
    w_bot : (2C, N) gamma-folded weight rows for the odd image row  ([x1|x3])
    bias  : (1, N)  beta @ W^T
    """
    R, two, Wo, twoC = x5.shape
    assert two == 2
    K2, N = w_top.shape
    assert K2 == twoC and w_bot.shape == (twoC, N)

    xs = x5.dtype.itemsize
    ws = w_top.dtype.itemsize

    # ---- choose TR (row pairs per grid step) from a VMEM budget -------------
    # per output-row bytes: double-buffered even+odd input tiles, double-buffered
    # output tile, in-kernel f32 + compute-dtype temporaries, f32 accumulator.
    per_row = twoC * xs * 4 + N * xs * 2 + twoC * (4 + ws) * 2 + N * 4
    weight_bytes = (2 * twoC * N + N) * ws * 2 + N * 4 * 2
    row_budget = max(vmem_limit_bytes * 3 // 4 - weight_bytes, 4 * 1024 * 1024)
    tr = min(unroll_cap,                          # bound static unroll / code size
             R,
             max(1, target_rows // Wo),           # ~512 output rows/step ~ HBM roofline
             max(1, row_budget // (per_row * Wo)))
    tr = max(tr, 1)
    steps = pl.cdiv(R, tr)
    if steps < 2 and tr > 1:                      # keep both TensorCores busy (megacore)
        tr = pl.cdiv(R, 2)
        steps = pl.cdiv(R, tr)

    kernel = functools.partial(_patch_merge_kernel, eps=eps, tr=tr)

    x_block = (tr, None, Wo, twoC)
    grid_spec = pl.GridSpec(
        grid=(steps,),
        in_specs=[
            # same HBM array passed twice: row-parity dim index 0 / 1
            pl.BlockSpec(x_block, lambda i: (i, 0, 0, 0)),   # even image rows
            pl.BlockSpec(x_block, lambda i: (i, 1, 0, 0)),   # odd image rows
            # resident operands: constant index map -> fetched once
            pl.BlockSpec((twoC, N), lambda i: (0, 0)),
            pl.BlockSpec((twoC, N), lambda i: (0, 0)),
            pl.BlockSpec((1, N), lambda i: (0, 0)),
        ],
        out_specs=pl.BlockSpec((tr, Wo, N), lambda i: (i, 0, 0)),
    )

    M = R * Wo
    cost = pl.CostEstimate(
        flops=2 * M * (2 * twoC) * N + 10 * M * 2 * twoC,
        transcendentals=M,                         # one rsqrt per output row
        bytes_accessed=M * 2 * twoC * xs + M * N * xs
                       + (2 * twoC * N + N) * ws + N * 4,
    )

    return pl.pallas_call(
        kernel,
        out_shape=jax.ShapeDtypeStruct((R, Wo, N), x5.dtype),
        grid_spec=grid_spec,
        compiler_params=pltpu.CompilerParams(
            # independent row slabs -> shard the grid across TensorCores
            dimension_semantics=("parallel",),
            # 48 MiB: above the 32 MiB scoped default, safely under v7x's 64 MiB
            # physical VMEM and far under v5e/v6e's 128 MiB.
            vmem_limit_bytes=vmem_limit_bytes,
        ),
        cost_estimate=cost,
    )(x5, x5, w_top, w_bot, bias)


class PatchMerging:
    """JAX/Pallas port of the PyTorch PatchMerging module (norm_layer=LayerNorm)."""

    def __init__(self, dim, eps=1e-5, key=None):
        self.dim = dim
        self.eps = eps
        if key is None:
            key = jax.random.PRNGKey(0)
        # nn.Linear(4*dim, 2*dim, bias=False); torch default init U(+-1/sqrt(fan_in))
        bound = (4 * dim) ** -0.5
        self.reduction_weight = jax.random.uniform(
            key, (2 * dim, 4 * dim), minval=-bound, maxval=bound, dtype=jnp.float32)
        # nn.LayerNorm(4*dim) default init
        self.norm_gamma = jnp.ones((4 * dim,), jnp.float32)
        self.norm_beta = jnp.zeros((4 * dim,), jnp.float32)

    def __call__(self, x, H, W, *, compute_dtype=jnp.bfloat16):
        """x: (B, H*W, C) -> (B, ceil(H/2)*ceil(W/2), 2C).

        compute_dtype: dtype of the MXU matmul operands (default bf16 per the
        perf review; LayerNorm statistics and accumulation stay f32).  Pass
        jnp.float32 for numerics closest to the torch f32 reference.
        """
        B, L, C = x.shape
        assert L == H * W, "input feature has wrong size"
        assert C == self.dim

        xr = x.reshape(B, H, W, C)
        pad_h, pad_w = H % 2, W % 2
        if pad_h or pad_w:
            # F.pad(x, (0, 0, 0, W % 2, 0, H % 2)): pad W on the right, H at the bottom.
            # TODO(synk): fuse this 1-row/col even-size pad into the kernel (tail
            # masking) to avoid the extra HBM pass when H or W is odd.
            xr = jnp.pad(xr, ((0, 0), (0, pad_h), (0, pad_w), (0, 0)))
        Ho, Wo = (H + pad_h) // 2, (W + pad_w) // 2

        # Free (metadata-only) view as row pairs: (B*Ho, hoff, Wo, (woff, c)).
        # The 2x2 gather itself happens inside the kernel's input DMAs.
        x5 = xr.reshape(B * Ho, 2, Wo, 2 * C)

        # Fold LayerNorm affine into the reduction weight / bias (tiny, offline):
        #   y = ((x - mean) * inv) @ (gamma[:, None] * W^T) + beta @ W^T
        w_t = self.norm_gamma[:, None] * self.reduction_weight.T          # (4C, 2C) f32
        # Kernel channel order: even image row carries [x0 | x2], odd row [x1 | x3].
        w_top = jnp.concatenate([w_t[0:C], w_t[2 * C:3 * C]], axis=0).astype(compute_dtype)
        w_bot = jnp.concatenate([w_t[C:2 * C], w_t[3 * C:4 * C]], axis=0).astype(compute_dtype)
        bias = (self.norm_beta @ self.reduction_weight.T).reshape(1, 2 * C).astype(jnp.float32)

        y = _fused_patch_merge(x5, w_top, w_bot, bias, eps=self.eps)
        return y.reshape(B, Ho * Wo, 2 * C)        # free reshape


def _reference(x, H, W, gamma, beta, w, eps):
    """Pure-JAX mirror of the PyTorch forward (for correctness checking)."""
    B, L, C = x.shape
    xr = x.reshape(B, H, W, C)
    pad_h, pad_w = H % 2, W % 2
    if pad_h or pad_w:
        xr = jnp.pad(xr, ((0, 0), (0, pad_h), (0, pad_w), (0, 0)))
    x0 = xr[:, 0::2, 0::2, :]
    x1 = xr[:, 1::2, 0::2, :]
    x2 = xr[:, 0::2, 1::2, :]
    x3 = xr[:, 1::2, 1::2, :]
    xc = jnp.concatenate([x0, x1, x2, x3], axis=-1).reshape(B, -1, 4 * C)
    mean = xc.mean(-1, keepdims=True)
    var = ((xc - mean) ** 2).mean(-1, keepdims=True)
    xn = (xc - mean) / jnp.sqrt(var + eps) * gamma + beta
    return xn @ w.T


if __name__ == "__main__":
    root = jax.random.PRNGKey(0)
    k_x1, k_x2, k_x3, k_w, k_g, k_b = jax.random.split(root, 6)

    dim = 32
    mod = PatchMerging(dim, key=k_w)
    # Perturb the layernorm affine away from identity to exercise the folding.
    mod.norm_gamma = 1.0 + 0.1 * jax.random.normal(k_g, (4 * dim,), dtype=jnp.float32)
    mod.norm_beta = 0.1 * jax.random.normal(k_b, (4 * dim,), dtype=jnp.float32)

    # 1) Small even-sized input, f32 matmul operands (tight tolerance).
    B, H, W = 2, 16, 16
    x = jax.random.normal(k_x1, (B, H * W, dim), dtype=jnp.float32)
    y = jax.block_until_ready(mod(x, H, W, compute_dtype=jnp.float32))
    y_ref = _reference(x, H, W, mod.norm_gamma, mod.norm_beta, mod.reduction_weight, mod.eps)
    assert y.shape == (B, (H // 2) * (W // 2), 2 * dim), y.shape
    err = float(jnp.max(jnp.abs(y - y_ref)))
    assert err < 1e-4, f"even-case max abs err {err}"

    # 2) Odd H/W -> padding path, and Wo (=5) not a multiple of 8.
    H2, W2 = 7, 9
    x2 = jax.random.normal(k_x2, (B, H2 * W2, dim), dtype=jnp.float32)
    y2 = jax.block_until_ready(mod(x2, H2, W2, compute_dtype=jnp.float32))
    y2_ref = _reference(x2, H2, W2, mod.norm_gamma, mod.norm_beta, mod.reduction_weight, mod.eps)
    assert y2.shape == (B, ((H2 + 1) // 2) * ((W2 + 1) // 2), 2 * dim), y2.shape
    err2 = float(jnp.max(jnp.abs(y2 - y2_ref)))
    assert err2 < 1e-4, f"odd-case max abs err {err2}"

    # 3) Larger input, default bf16 matmul operands, several pipelined row slabs.
    H3, W3 = 64, 64
    x3 = jax.random.normal(k_x3, (B, H3 * W3, dim), dtype=jnp.float32)
    y3 = jax.block_until_ready(mod(x3, H3, W3))
    y3_ref = _reference(x3, H3, W3, mod.norm_gamma, mod.norm_beta, mod.reduction_weight, mod.eps)
    err3 = float(jnp.max(jnp.abs(y3 - y3_ref)))
    assert err3 < 5e-2, f"bf16-case max abs err {err3}"

    print("KERNEL_OK")
</pallas_src>

<mosaic_0001>
module attributes {stable_mosaic.version = 11 : i64} {
  func.func @_patch_merge_kernel(%arg0: i32, %arg1: memref<8x1x8x64xf32, #tpu.memory_space<vmem>>, %arg2: memref<8x1x8x64xf32, #tpu.memory_space<vmem>>, %arg3: memref<64x64xf32, #tpu.memory_space<vmem>>, %arg4: memref<64x64xf32, #tpu.memory_space<vmem>>, %arg5: memref<1x64xf32, #tpu.memory_space<vmem>>, %arg6: memref<8x8x64xf32, #tpu.memory_space<vmem>>) attributes {dimension_semantics = [#tpu.dimension_semantics<parallel>], iteration_bounds = array<i64: 2>, scalar_prefetch = 0 : i64, scratch_operands = 0 : i64, tpu.core_type = #tpu.core_type<tc>, window_params = [{transform_indices = @transform_0, window_bounds = array<i64: 8, 1, 8, 64>}, {transform_indices = @transform_1, window_bounds = array<i64: 8, 1, 8, 64>}, {pipeline_mode = #tpu.pipeline_mode<synchronous>, transform_indices = @transform_2, window_bounds = array<i64: 64, 64>}, {pipeline_mode = #tpu.pipeline_mode<synchronous>, transform_indices = @transform_3, window_bounds = array<i64: 64, 64>}, {pipeline_mode = #tpu.pipeline_mode<synchronous>, transform_indices = @transform_4, window_bounds = array<i64: 1, 64>}, {transform_indices = @transform_5, window_bounds = array<i64: 8, 8, 64>}]} {
    %c0 = arith.constant 0 : index
    %c0_0 = arith.constant 0 : index
    %c0_1 = arith.constant 0 : index
    %c0_2 = arith.constant 0 : index
    %0 = vector.load %arg1[%c0, %c0_0, %c0_1, %c0_2] : memref<8x1x8x64xf32, #tpu.memory_space<vmem>>, vector<8x1x8x64xf32>
    %1 = vector.shape_cast %0 : vector<8x1x8x64xf32> to vector<8x8x64xf32>
    %c0_3 = arith.constant 0 : index
    %c0_4 = arith.constant 0 : index
    %c0_5 = arith.constant 0 : index
    %c0_6 = arith.constant 0 : index
    %2 = vector.load %arg2[%c0_3, %c0_4, %c0_5, %c0_6] : memref<8x1x8x64xf32, #tpu.memory_space<vmem>>, vector<8x1x8x64xf32>
    %3 = vector.shape_cast %2 : vector<8x1x8x64xf32> to vector<8x8x64xf32>
    %cst = arith.constant dense<0.000000e+00> : vector<8x8xf32>
    %4 = vector.multi_reduction <add>, %1, %cst [2] : vector<8x8x64xf32> to vector<8x8xf32>
    %5 = vector.shape_cast %4 : vector<8x8xf32> to vector<8x8x1xf32>
    %cst_7 = arith.constant dense<0.000000e+00> : vector<8x8xf32>
    %6 = vector.multi_reduction <add>, %3, %cst_7 [2] : vector<8x8x64xf32> to vector<8x8xf32>
    %7 = vector.shape_cast %6 : vector<8x8xf32> to vector<8x8x1xf32>
    %8 = arith.addf %5, %7 : vector<8x8x1xf32>
    %9 = arith.mulf %1, %1 : vector<8x8x64xf32>
    %cst_8 = arith.constant dense<0.000000e+00> : vector<8x8xf32>
    %10 = vector.multi_reduction <add>, %9, %cst_8 [2] : vector<8x8x64xf32> to vector<8x8xf32>
    %11 = vector.shape_cast %10 : vector<8x8xf32> to vector<8x8x1xf32>
    %12 = arith.mulf %3, %3 : vector<8x8x64xf32>
    %cst_9 = arith.constant dense<0.000000e+00> : vector<8x8xf32>
    %13 = vector.multi_reduction <add>, %12, %cst_9 [2] : vector<8x8x64xf32> to vector<8x8xf32>
    %14 = vector.shape_cast %13 : vector<8x8xf32> to vector<8x8x1xf32>
    %15 = arith.addf %11, %14 : vector<8x8x1xf32>
    %cst_10 = arith.constant 7.812500e-03 : f32
    %16 = vector.broadcast %cst_10 : f32 to vector<8x8x1xf32>
    %17 = arith.mulf %8, %16 : vector<8x8x1xf32>
    %cst_11 = arith.constant 7.812500e-03 : f32
    %18 = vector.broadcast %cst_11 : f32 to vector<8x8x1xf32>
    %19 = arith.mulf %15, %18 : vector<8x8x1xf32>
    %20 = arith.mulf %17, %17 : vector<8x8x1xf32>
    %21 = arith.subf %19, %20 : vector<8x8x1xf32>
    %cst_12 = arith.constant 9.99999974E-6 : f32
    %22 = vector.broadcast %cst_12 : f32 to vector<8x8x1xf32>
    %23 = arith.addf %21, %22 : vector<8x8x1xf32>
    %24 = math.rsqrt %23 : vector<8x8x1xf32>
    %25 = vector.broadcast %17 : vector<8x8x1xf32> to vector<8x8x64xf32>
    %26 = arith.subf %1, %25 : vector<8x8x64xf32>
    %27 = vector.broadcast %24 : vector<8x8x1xf32> to vector<8x8x64xf32>
    %28 = arith.mulf %26, %27 : vector<8x8x64xf32>
    %29 = vector.broadcast %17 : vector<8x8x1xf32> to vector<8x8x64xf32>
    %30 = arith.subf %3, %29 : vector<8x8x64xf32>
    %31 = vector.broadcast %24 : vector<8x8x1xf32> to vector<8x8x64xf32>
    %32 = arith.mulf %30, %31 : vector<8x8x64xf32>
    %c0_13 = arith.constant 0 : index
    %c0_14 = arith.constant 0 : index
    %33 = vector.load %arg3[%c0_13, %c0_14] : memref<64x64xf32, #tpu.memory_space<vmem>>, vector<64x64xf32>
    %c0_15 = arith.constant 0 : index
    %c0_16 = arith.constant 0 : index
    %34 = vector.load %arg4[%c0_15, %c0_16] : memref<64x64xf32, #tpu.memory_space<vmem>>, vector<64x64xf32>
    %c0_17 = arith.constant 0 : index
    %c0_18 = arith.constant 0 : index
    %35 = vector.load %arg5[%c0_17, %c0_18] : memref<1x64xf32, #tpu.memory_space<vmem>>, vector<1x64xf32>
    %36 = vector.extract_strided_slice %28 {offsets = [0, 0, 0], sizes = [1, 8, 64], strides = [1, 1, 1]} : vector<8x8x64xf32> to vector<1x8x64xf32>
    %37 = vector.shape_cast %36 : vector<1x8x64xf32> to vector<8x64xf32>
    %cst_19 = arith.constant dense<0.000000e+00> : vector<8x64xf32>
    %38 = tpu.matmul %37, %33, %cst_19 {dimension_numbers = #tpu.dot_dimension_numbers<[1], [0], [0], [1], [0, 0, 1, 1], [], []>} : vector<8x64xf32>, vector<64x64xf32>, vector<8x64xf32> -> vector<8x64xf32>
    %39 = vector.extract_strided_slice %32 {offsets = [0, 0, 0], sizes = [1, 8, 64], strides = [1, 1, 1]} : vector<8x8x64xf32> to vector<1x8x64xf32>
    %40 = vector.shape_cast %39 : vector<1x8x64xf32> to vector<8x64xf32>
    %cst_20 = arith.constant dense<0.000000e+00> : vector<8x64xf32>
    %41 = tpu.matmul %40, %34, %cst_20 {dimension_numbers = #tpu.dot_dimension_numbers<[1], [0], [0], [1], [0, 0, 1, 1], [], []>} : vector<8x64xf32>, vector<64x64xf32>, vector<8x64xf32> -> vector<8x64xf32>
    %42 = arith.addf %38, %41 : vector<8x64xf32>
    %43 = vector.broadcast %35 : vector<1x64xf32> to vector<8x64xf32>
    %44 = arith.addf %42, %43 : vector<8x64xf32>
    %c0_21 = arith.constant 0 : index
    %c0_22 = arith.constant 0 : index
    %c0_23 = arith.constant 0 : index
    %45 = vector.load %arg6[%c0_21, %c0_22, %c0_23] : memref<8x8x64xf32, #tpu.memory_space<vmem>>, vector<1x8x64xf32>
    %46 = vector.shape_cast %45 : vector<1x8x64xf32> to vector<8x64xf32>
    %47 = vector.shape_cast %44 : vector<8x64xf32> to vector<1x8x64xf32>
    tpu.vector_store %arg6[%c0_21, %c0_22, %c0_23], %47 {strides = array<i32>} : memref<8x8x64xf32, #tpu.memory_space<vmem>>, vector<1x8x64xf32>,
    %48 = vector.extract_strided_slice %28 {offsets = [1, 0, 0], sizes = [1, 8, 64], strides = [1, 1, 1]} : vector<8x8x64xf32> to vector<1x8x64xf32>
    %49 = vector.shape_cast %48 : vector<1x8x64xf32> to vector<8x64xf32>
    %cst_24 = arith.constant dense<0.000000e+00> : vector<8x64xf32>
    %50 = tpu.matmul %49, %33, %cst_24 {dimension_numbers = #tpu.dot_dimension_numbers<[1], [0], [0], [1], [0, 0, 1, 1], [], []>} : vector<8x64xf32>, vector<64x64xf32>, vector<8x64xf32> -> vector<8x64xf32>
    %51 = vector.extract_strided_slice %32 {offsets = [1, 0, 0], sizes = [1, 8, 64], strides = [1, 1, 1]} : vector<8x8x64xf32> to vector<1x8x64xf32>
    %52 = vector.shape_cast %51 : vector<1x8x64xf32> to vector<8x64xf32>
    %cst_25 = arith.constant dense<0.000000e+00> : vector<8x64xf32>
    %53 = tpu.matmul %52, %34, %cst_25 {dimension_numbers = #tpu.dot_dimension_numbers<[1], [0], [0], [1], [0, 0, 1, 1], [], []>} : vector<8x64xf32>, vector<64x64xf32>, vector<8x64xf32> -> vector<8x64xf32>
    %54 = arith.addf %50, %53 : vector<8x64xf32>
    %55 = vector.broadcast %35 : vector<1x64xf32> to vector<8x64xf32>
    %56 = arith.addf %54, %55 : vector<8x64xf32>
    %c1 = arith.constant 1 : index
    %c0_26 = arith.constant 0 : index
    %c0_27 = arith.constant 0 : index
    %57 = vector.load %arg6[%c1, %c0_26, %c0_27] : memref<8x8x64xf32, #tpu.memory_space<vmem>>, vector<1x8x64xf32>
    %58 = vector.shape_cast %57 : vector<1x8x64xf32> to vector<8x64xf32>
    %59 = vector.shape_cast %56 : vector<8x64xf32> to vector<1x8x64xf32>
    tpu.vector_store %arg6[%c1, %c0_26, %c0_27], %59 {strides = array<i32>} : memref<8x8x64xf32, #tpu.memory_space<vmem>>, vector<1x8x64xf32>,
    %60 = vector.extract_strided_slice %28 {offsets = [2, 0, 0], sizes = [1, 8, 64], strides = [1, 1, 1]} : vector<8x8x64xf32> to vector<1x8x64xf32>
    %61 = vector.shape_cast %60 : vector<1x8x64xf32> to vector<8x64xf32>
    %cst_28 = arith.constant dense<0.000000e+00> : vector<8x64xf32>
    %62 = tpu.matmul %61, %33, %cst_28 {dimension_numbers = #tpu.dot_dimension_numbers<[1], [0], [0], [1], [0, 0, 1, 1], [], []>} : vector<8x64xf32>, vector<64x64xf32>, vector<8x64xf32> -> vector<8x64xf32>
    %63 = vector.extract_strided_slice %32 {offsets = [2, 0, 0], sizes = [1, 8, 64], strides = [1, 1, 1]} : vector<8x8x64xf32> to vector<1x8x64xf32>
    %64 = vector.shape_cast %63 : vector<1x8x64xf32> to vector<8x64xf32>
    %cst_29 = arith.constant dense<0.000000e+00> : vector<8x64xf32>
    %65 = tpu.matmul %64, %34, %cst_29 {dimension_numbers = #tpu.dot_dimension_numbers<[1], [0], [0], [1], [0, 0, 1, 1], [], []>} : vector<8x64xf32>, vector<64x64xf32>, vector<8x64xf32> -> vector<8x64xf32>
    %66 = arith.addf %62, %65 : vector<8x64xf32>
    %67 = vector.broadcast %35 : vector<1x64xf32> to vector<8x64xf32>
    %68 = arith.addf %66, %67 : vector<8x64xf32>
    %c2 = arith.constant 2 : index
    %c0_30 = arith.constant 0 : index
    %c0_31 = arith.constant 0 : index
    %69 = vector.load %arg6[%c2, %c0_30, %c0_31] : memref<8x8x64xf32, #tpu.memory_space<vmem>>, vector<1x8x64xf32>
    %70 = vector.shape_cast %69 : vector<1x8x64xf32> to vector<8x64xf32>
    %71 = vector.shape_cast %68 : vector<8x64xf32> to vector<1x8x64xf32>
    tpu.vector_store %arg6[%c2, %c0_30, %c0_31], %71 {strides = array<i32>} : memref<8x8x64xf32, #tpu.memory_space<vmem>>, vector<1x8x64xf32>,
    %72 = vector.extract_strided_slice %28 {offsets = [3, 0, 0], sizes = [1, 8, 64], strides = [1, 1, 1]} : vector<8x8x64xf32> to vector<1x8x64xf32>
    %73 = vector.shape_cast %72 : vector<1x8x64xf32> to vector<8x64xf32>
    %cst_32 = arith.constant dense<0.000000e+00> : vector<8x64xf32>
    %74 = tpu.matmul %73, %33, %cst_32 {dimension_numbers = #tpu.dot_dimension_numbers<[1], [0], [0], [1], [0, 0, 1, 1], [], []>} : vector<8x64xf32>, vector<64x64xf32>, vector<8x64xf32> -> vector<8x64xf32>
    %75 = vector.extract_strided_slice %32 {offsets = [3, 0, 0], sizes = [1, 8, 64], strides = [1, 1, 1]} : vector<8x8x64xf32> to vector<1x8x64xf32>
    %76 = vector.shape_cast %75 : vector<1x8x64xf32> to vector<8x64xf32>
    %cst_33 = arith.constant dense<0.000000e+00> : vector<8x64xf32>
    %77 = tpu.matmul %76, %34, %cst_33 {dimension_numbers = #tpu.dot_dimension_numbers<[1], [0], [0], [1], [0, 0, 1, 1], [], []>} : vector<8x64xf32>, vector<64x64xf32>, vector<8x64xf32> -> vector<8x64xf32>
    %78 = arith.addf %74, %77 : vector<8x64xf32>
    %79 = vector.broadcast %35 : vector<1x64xf32> to vector<8x64xf32>
    %80 = arith.addf %78, %79 : vector<8x64xf32>
    %c3 = arith.constant 3 : index
    %c0_34 = arith.constant 0 : index
    %c0_35 = arith.constant 0 : index
    %81 = vector.load %arg6[%c3, %c0_34, %c0_35] : memref<8x8x64xf32, #tpu.memory_space<vmem>>, vector<1x8x64xf32>
    %82 = vector.shape_cast %81 : vector<1x8x64xf32> to vector<8x64xf32>
    %83 = vector.shape_cast %80 : vector<8x64xf32> to vector<1x8x64xf32>
    tpu.vector_store %arg6[%c3, %c0_34, %c0_35], %83 {strides = array<i32>} : memref<8x8x64xf32, #tpu.memory_space<vmem>>, vector<1x8x64xf32>,
    %84 = vector.extract_strided_slice %28 {offsets = [4, 0, 0], sizes = [1, 8, 64], strides = [1, 1, 1]} : vector<8x8x64xf32> to vector<1x8x64xf32>
    %85 = vector.shape_cast %84 : vector<1x8x64xf32> to vector<8x64xf32>
    %cst_36 = arith.constant dense<0.000000e+00> : vector<8x64xf32>
    %86 = tpu.matmul %85, %33, %cst_36 {dimension_numbers = #tpu.dot_dimension_numbers<[1], [0], [0], [1], [0, 0, 1, 1], [], []>} : vector<8x64xf32>, vector<64x64xf32>, vector<8x64xf32> -> vector<8x64xf32>
    %87 = vector.extract_strided_slice %32 {offsets = [4, 0, 0], sizes = [1, 8, 64], strides = [1, 1, 1]} : vector<8x8x64xf32> to vector<1x8x64xf32>
    %88 = vector.shape_cast %87 : vector<1x8x64xf32> to vector<8x64xf32>
    %cst_37 = arith.constant dense<0.000000e+00> : vector<8x64xf32>
    %89 = tpu.matmul %88, %34, %cst_37 {dimension_numbers = #tpu.dot_dimension_numbers<[1], [0], [0], [1], [0, 0, 1, 1], [], []>} : vector<8x64xf32>, vector<64x64xf32>, vector<8x64xf32> -> vector<8x64xf32>
    %90 = arith.addf %86, %89 : vector<8x64xf32>
    %91 = vector.broadcast %35 : vector<1x64xf32> to vector<8x64xf32>
    %92 = arith.addf %90, %91 : vector<8x64xf32>
    %c4 = arith.constant 4 : index
    %c0_38 = arith.constant 0 : index
    %c0_39 = arith.constant 0 : index
    %93 = vector.load %arg6[%c4, %c0_38, %c0_39] : memref<8x8x64xf32, #tpu.memory_space<vmem>>, vector<1x8x64xf32>
    %94 = vector.shape_cast %93 : vector<1x8x64xf32> to vector<8x64xf32>
    %95 = vector.shape_cast %92 : vector<8x64xf32> to vector<1x8x64xf32>
    tpu.vector_store %arg6[%c4, %c0_38, %c0_39], %95 {strides = array<i32>} : memref<8x8x64xf32, #tpu.memory_space<vmem>>, vector<1x8x64xf32>,
    %96 = vector.extract_strided_slice %28 {offsets = [5, 0, 0], sizes = [1, 8, 64], strides = [1, 1, 1]} : vector<8x8x64xf32> to vector<1x8x64xf32>
    %97 = vector.shape_cast %96 : vector<1x8x64xf32> to vector<8x64xf32>
    %cst_40 = arith.constant dense<0.000000e+00> : vector<8x64xf32>
    %98 = tpu.matmul %97, %33, %cst_40 {dimension_numbers = #tpu.dot_dimension_numbers<[1], [0], [0], [1], [0, 0, 1, 1], [], []>} : vector<8x64xf32>, vector<64x64xf32>, vector<8x64xf32> -> vector<8x64xf32>
    %99 = vector.extract_strided_slice %32 {offsets = [5, 0, 0], sizes = [1, 8, 64], strides = [1, 1, 1]} : vector<8x8x64xf32> to vector<1x8x64xf32>
    %100 = vector.shape_cast %99 : vector<1x8x64xf32> to vector<8x64xf32>
    %cst_41 = arith.constant dense<0.000000e+00> : vector<8x64xf32>
    %101 = tpu.matmul %100, %34, %cst_41 {dimension_numbers = #tpu.dot_dimension_numbers<[1], [0], [0], [1], [0, 0, 1, 1], [], []>} : vector<8x64xf32>, vector<64x64xf32>, vector<8x64xf32> -> vector<8x64xf32>
    %102 = arith.addf %98, %101 : vector<8x64xf32>
    %103 = vector.broadcast %35 : vector<1x64xf32> to vector<8x64xf32>
    %104 = arith.addf %102, %103 : vector<8x64xf32>
    %c5 = arith.constant 5 : index
    %c0_42 = arith.constant 0 : index
    %c0_43 = arith.constant 0 : index
    %105 = vector.load %arg6[%c5, %c0_42, %c0_43] : memref<8x8x64xf32, #tpu.memory_space<vmem>>, vector<1x8x64xf32>
    %106 = vector.shape_cast %105 : vector<1x8x64xf32> to vector<8x64xf32>
    %107 = vector.shape_cast %104 : vector<8x64xf32> to vector<1x8x64xf32>
    tpu.vector_store %arg6[%c5, %c0_42, %c0_43], %107 {strides = array<i32>} : memref<8x8x64xf32, #tpu.memory_space<vmem>>, vector<1x8x64xf32>,
    %108 = vector.extract_strided_slice %28 {offsets = [6, 0, 0], sizes = [1, 8, 64], strides = [1, 1, 1]} : vector<8x8x64xf32> to vector<1x8x64xf32>
    %109 = vector.shape_cast %108 : vector<1x8x64xf32> to vector<8x64xf32>
    %cst_44 = arith.constant dense<0.000000e+00> : vector<8x64xf32>
    %110 = tpu.matmul %109, %33, %cst_44 {dimension_numbers = #tpu.dot_dimension_numbers<[1], [0], [0], [1], [0, 0, 1, 1], [], []>} : vector<8x64xf32>, vector<64x64xf32>, vector<8x64xf32> -> vector<8x64xf32>
    %111 = vector.extract_strided_slice %32 {offsets = [6, 0, 0], sizes = [1, 8, 64], strides = [1, 1, 1]} : vector<8x8x64xf32> to vector<1x8x64xf32>
    %112 = vector.shape_cast %111 : vector<1x8x64xf32> to vector<8x64xf32>
    %cst_45 = arith.constant dense<0.000000e+00> : vector<8x64xf32>
    %113 = tpu.matmul %112, %34, %cst_45 {dimension_numbers = #tpu.dot_dimension_numbers<[1], [0], [0], [1], [0, 0, 1, 1], [], []>} : vector<8x64xf32>, vector<64x64xf32>, vector<8x64xf32> -> vector<8x64xf32>
    %114 = arith.addf %110, %113 : vector<8x64xf32>
    %115 = vector.broadcast %35 : vector<1x64xf32> to vector<8x64xf32>
    %116 = arith.addf %114, %115 : vector<8x64xf32>
    %c6 = arith.constant 6 : index
    %c0_46 = arith.constant 0 : index
    %c0_47 = arith.constant 0 : index
    %117 = vector.load %arg6[%c6, %c0_46, %c0_47] : memref<8x8x64xf32, #tpu.memory_space<vmem>>, vector<1x8x64xf32>
    %118 = vector.shape_cast %117 : vector<1x8x64xf32> to vector<8x64xf32>
    %119 = vector.shape_cast %116 : vector<8x64xf32> to vector<1x8x64xf32>
    tpu.vector_store %arg6[%c6, %c0_46, %c0_47], %119 {strides = array<i32>} : memref<8x8x64xf32, #tpu.memory_space<vmem>>, vector<1x8x64xf32>,
    %120 = vector.extract_strided_slice %28 {offsets = [7, 0, 0], sizes = [1, 8, 64], strides = [1, 1, 1]} : vector<8x8x64xf32> to vector<1x8x64xf32>
    %121 = vector.shape_cast %120 : vector<1x8x64xf32> to vector<8x64xf32>
    %cst_48 = arith.constant dense<0.000000e+00> : vector<8x64xf32>
    %122 = tpu.matmul %121, %33, %cst_48 {dimension_numbers = #tpu.dot_dimension_numbers<[1], [0], [0], [1], [0, 0, 1, 1], [], []>} : vector<8x64xf32>, vector<64x64xf32>, vector<8x64xf32> -> vector<8x64xf32>
    %123 = vector.extract_strided_slice %32 {offsets = [7, 0, 0], sizes = [1, 8, 64], strides = [1, 1, 1]} : vector<8x8x64xf32> to vector<1x8x64xf32>
    %124 = vector.shape_cast %123 : vector<1x8x64xf32> to vector<8x64xf32>
    %cst_49 = arith.constant dense<0.000000e+00> : vector<8x64xf32>
    %125 = tpu.matmul %124, %34, %cst_49 {dimension_numbers = #tpu.dot_dimension_numbers<[1], [0], [0], [1], [0, 0, 1, 1], [], []>} : vector<8x64xf32>, vector<64x64xf32>, vector<8x64xf32> -> vector<8x64xf32>
    %126 = arith.addf %122, %125 : vector<8x64xf32>
    %127 = vector.broadcast %35 : vector<1x64xf32> to vector<8x64xf32>
    %128 = arith.addf %126, %127 : vector<8x64xf32>
    %c7 = arith.constant 7 : index
    %c0_50 = arith.constant 0 : index
    %c0_51 = arith.constant 0 : index
    %129 = vector.load %arg6[%c7, %c0_50, %c0_51] : memref<8x8x64xf32, #tpu.memory_space<vmem>>, vector<1x8x64xf32>
    %130 = vector.shape_cast %129 : vector<1x8x64xf32> to vector<8x64xf32>
    %131 = vector.shape_cast %128 : vector<8x64xf32> to vector<1x8x64xf32>
    tpu.vector_store %arg6[%c7, %c0_50, %c0_51], %131 {strides = array<i32>} : memref<8x8x64xf32, #tpu.memory_space<vmem>>, vector<1x8x64xf32>,
    return
  }
  func.func @transform_0(%arg0: i32) -> (i32, i32, i32, i32) {
    %c0_i32 = arith.constant 0 : i32
    %c0_i32_0 = arith.constant 0 : i32
    %c0_i32_1 = arith.constant 0 : i32
    %c0_i32_2 = arith.constant 0 : i32
    return %arg0, %c0_i32, %c0_i32_0, %c0_i32_1 : i32, i32, i32, i32
  }
  func.func @transform_1(%arg0: i32) -> (i32, i32, i32, i32) {
    %c1_i32 = arith.constant 1 : i32
    %c0_i32 = arith.constant 0 : i32
    %c0_i32_0 = arith.constant 0 : i32
    %c0_i32_1 = arith.constant 0 : i32
    return %arg0, %c1_i32, %c0_i32, %c0_i32_0 : i32, i32, i32, i32
  }
  func.func @transform_2(%arg0: i32) -> (i32, i32) {
    %c0_i32 = arith.constant 0 : i32
    %c0_i32_0 = arith.constant 0 : i32
    %c0_i32_1 = arith.constant 0 : i32
    return %c0_i32, %c0_i32_0 : i32, i32
  }
  func.func @transform_3(%arg0: i32) -> (i32, i32) {
    %c0_i32 = arith.constant 0 : i32
    %c0_i32_0 = arith.constant 0 : i32
    %c0_i32_1 = arith.constant 0 : i32
    return %c0_i32, %c0_i32_0 : i32, i32
  }
  func.func @transform_4(%arg0: i32) -> (i32, i32) {
    %c0_i32 = arith.constant 0 : i32
    %c0_i32_0 = arith.constant 0 : i32
    %c0_i32_1 = arith.constant 0 : i32
    return %c0_i32, %c0_i32_0 : i32, i32
  }
  func.func @transform_5(%arg0: i32) -> (i32, i32, i32) {
    %c0_i32 = arith.constant 0 : i32
    %c0_i32_0 = arith.constant 0 : i32
    %c0_i32_1 = arith.constant 0 : i32
    return %arg0, %c0_i32, %c0_i32_0 : i32, i32, i32
  }
}

</mosaic_0001>

<bundles_post_ra>
// kernel: tpu_custom_call.1
= control target key start
LH: loop header
LB: loop body
LE: loop exit
PB: predicated region body
PF: predicated region fallthrough
CT: control target
= control target key end

     0   :  { %s2136_s0 = inlined_call_operand.hbm [shape: f32[16,2,8,64], index: 0, kind: input, shape index: {}]   ;;  %s2137_s1 = inlined_call_operand.hbm [shape: f32[16,2,8,64], index: 1, kind: input, shape index: {}]   ;;  %s2138_s2 = inlined_call_operand.hbm [shape: f32[64,64], index: 2, kind: input, shape index: {}]   ;;  %s2139_s3 = inlined_call_operand.hbm [shape: f32[64,64], index: 3, kind: input, shape index: {}]   ;;  %s2140_s4 = inlined_call_operand.vmem [shape: f32[1,64], index: 4, kind: input, shape index: {}]   ;;  %s2141_s5 = inlined_call_operand.hbm [shape: f32[16,8,64], index: 5, kind: output, shape index: {}]  }
   0x1   :  { %2147 = sst [smem:[#allocation18_spill]] %s2136_s0 }
   0x2   :  { %2148 = sst [smem:[#allocation19_spill]] %s2138_s2 }
   0x3   :  { %2149 = sst [smem:[#allocation20_spill]] %s2139_s3 }
   0x4   :  { %10 = vsyncpa [#allocation3], 0 }
   0x5   :  { %12 = vsyncpa [#allocation3 + $0x1], 0 }
   0x6   :  { %13 = vsyncpa [#allocation6], 0 }
   0x7   :  { %15 = vsyncpa [#allocation6 + $0x1], 0 }
   0x8   :  { %16 = vsyncpa [#allocation9], 0 }
   0x9   :  { %17 = vsyncpa [#allocation4], 0 }
   0xa   :  { %19 = vsyncpa [#allocation4 + $0x1], 0  ;;  %s1548_s18 = smov 0   ;;  %s1550_s19 = smov 0  }
   0xb   :  { %s1552_s20 = smov 0   ;;  %s1554_s21 = smov 0  }
   0xc LB: > { %2150 = sst [smem:[#allocation16_spill]] %s1505_s20  ;;  %s1569_s22 = sadd.s32 4294967295, %s1509_s21   ;;  %s1509_s21 = sphi %s1554_s21, %s2167_s21   ;;  %s1505_s20 = sphi %s1552_s20, %s2164_s20   ;;  %s1501_s19 = sphi %s1550_s19, %s2166_s19   ;;  %s1497_s18 = sphi %s1548_s18, %s2165_s18  }
   0xd   : > { %s1167_s23 = sadd.s32 4294967294, %s1509_s21   ;;  %p45_p0 = scmp.ne.s32.totalorder %s1501_s19, %s1497_s18 }
   0xe   : > { %p46_p1 = scmp.eq.s32.totalorder %s1569_s22, 0  ;;  %p158_p2 = scmp.eq.s32.totalorder %s1569_s22, 1 }
   0xf   : > { %p164_p3 = scmp.eq.s32.totalorder %s1167_s23, 1  ;;  %p1168_p5 = scmp.ge.s32.totalorder %s1509_s21, 1 }
  0x10   : > { %p1578_p4 = por %p46_p1, %p45_p0  ;;  %p171_p7 = scmp.lt.s32.totalorder %s1509_s21, 3 }
  0x11   : > { %p1583_p6 = por %p164_p3, %p45_p0  ;;  %s2153_s2 = sld [smem:[#allocation19_spill]] }
  0x12   : > { %p1591_p8 = pnand %p1168_p5, %p171_p7  ;;  %s1511_s30 = smov [#allocation7]  }
  0x13   : > { %s184_s6 = sshll.u32 %s1511_s30, 4  ;;  %s2155_s3 = sld [smem:[#allocation20_spill]]  ;;  %s185_s6 = int_to_ptr.vmem [resolvable:$true] %s184_s6 }
  0x14   : > { %p1231_p9 = pneg %p1591_p8  ;;  %s2142_s10 = smov 128  }
  0x15   : > { %s2144_s11 = smov 8   ;;  %s1514_s12 = smov [#allocation8]  }
  0x16   : > { %p1232_p10 = pnand %p1231_p9, %p46_p1  ;;  %s198_s13 = sshll.u32 %s1514_s12, 4  ;;  %s199_s13 = int_to_ptr.vmem [resolvable:$true] %s198_s13 }
  0x17   : > { %s182_s28 = sshll.u32 %s2153_s2, 4  ;;  %s1610_s14 = sadd.s32 1, %s1509_s21   ;;  %s183_s28 = int_to_ptr.hbm [resolvable:$true] %s182_s28 }
  0x18   : > { %1234 = dma.hbm_to_vmem [thread:$0]  (!%p1232_p10), %s183_s28, 1024, %s185_s6, [#allocation6], %s2142_s10, %s2142_s10, %s2144_s11  }
  0x19   : > { %s196_s9 = sshll.u32 %s2155_s3, 4  ;;  %s32_s15 = sadd.s32 1, %s1505_s20  ;;  %s197_s9 = int_to_ptr.hbm [resolvable:$true] %s196_s9 }
  0x1a   : > { %1237 = dma.hbm_to_vmem [thread:$0]  (!%p1232_p10), %s197_s9, 1024, %s199_s13, [#allocation9], %s2142_s10, %s2142_s10, %s2144_s11  }
  0x1b   : > { %s29_s16 = ssub.s32 %s1509_s21, %s1610_s14  ;;  %p39_p12 = scmp.ne.s32.totalorder %s1505_s20, %s1501_s19 }
  0x1c   : > { %p30_p13 = scmp.eq.s32.totalorder %s29_s16, 0  ;;  %p40_p0 = scmp.eq.s32.totalorder %s1509_s21, 0 }
  0x1d   : > { %p1620_p3 = por %p158_p2, %p39_p12  ;;  %p1251_p5 = scmp.lt.s32.totalorder %s1509_s21, 2 }
  0x1e   : > { %s1626_s23 = scalar_select %p30_p13, %s1505_s20, %s32_s15  }
  0x1f   : > { %p41_p7 = por %p40_p0, %p39_p12  ;;  %s215_s26 = sand.u32 1, %s1505_s20  }
  0x20   : > { %2157 = sst [smem:[#allocation17_spill]] %s1626_s23  ;;  %s1629_s27 = sshll.u32 %s215_s26, 6 }
  0x21   : > { %s1214_s28 = sshll.u32 %s1509_s21, 7  ;;  %s2158_s0 = sld [smem:[#allocation18_spill]] }
  0x22   : > { %s219_s8 = scalar_lea.vmem [#allocation2], %s1629_s27  ;;  %p1636_p2 = pnand %p1251_p5, %p41_p7 }
  0x23   : > { %s228_s9 = sshll.u32 %s219_s8, 4  ;;  %s1091_s10 = scalar_lea.hbm %s2137_s1, %s1214_s28  ;;  %s229_s9 = int_to_ptr.vmem [resolvable:$true] %s228_s9 }
  0x24   : > { %s216_s11 = scalar_lea.sflag [#allocation3], %s215_s26  ;;  %p1375_p10 = pneg %p1636_p2 }
  0x27   : > { %s225_s7 = scalar_lea.hbm %s2158_s0, %s1214_s28  ;;  %s1378_s8 = scalar_lea.hbm %s2158_s0, 256 }
  0x28   : > { %s226_s12 = sshll.u32 %s225_s7, 4  ;;  %s227_s12 = int_to_ptr.hbm [resolvable:$true] %s226_s12 }
  0x29   : > { %s1371_s2 = sshra.s32 %s227_s12, 4  ;;  %s1372_s2 = int_to_ptr.hbm [resolvable:$true] %s1371_s2 }
  0x2a   : > { %s1373_s30 = scalar_lea.hbm %s1372_s2, 64  ;;  %p1379_p0 = scmp.lt.s32.totalorder %s1372_s2, %s2158_s0 }
  0x2b   : > { %p1374_p9 = scmp.ne.s32.totalorder %s1372_s2, %s1373_s30  ;;  %p1380_p5 = scmp.lt.s32.totalorder %s1378_s8, %s1373_s30 }
  0x2d   : > { %p1376_p12 = pnand %p1375_p10, %p1374_p9  ;;  %p1381_p7 = por %p1380_p5, %p1379_p0 }
  0x2f   : > { %p1377_p13 = pneg %p1376_p12 }
  0x31   : > { %p1382_p11 = pnand %p1381_p7, %p1377_p13 }
  0x33   : > { %1385 = shalt.err (!%p1382_p11)
}
  0x34   : > { %s1515_s26 = smov 256   ;;  %s2160_s28 = smov 8  }
  0x35   : > { %s2161_s16 = smov 128   ;;  %s1092_s23 = scalar_lea.hbm %s1091_s10, 8 }
  0x36   : > { %1241 = dma.hbm_to_vmem [thread:$0]  (!%p1636_p2), %s227_s12, 1024, %s229_s9, %s216_s11, %s1515_s26, %s2161_s16, %s2160_s28  }
  0x37   : > { %s242_s6 = scalar_lea.vmem [#allocation5], %s1629_s27  ;;  %s250_s20 = sshll.u32 %s1092_s23, 4  ;;  %s251_s20 = int_to_ptr.hbm [resolvable:$true] %s250_s20 }
  0x38   : > { %s252_s7 = sshll.u32 %s242_s6, 4  ;;  %s238_s2 = sand.u32 1, %s1509_s21   ;;  %s253_s7 = int_to_ptr.vmem [resolvable:$true] %s252_s7 }
  0x39   : > { %s239_s3 = scalar_lea.sflag [#allocation6], %s238_s2  ;;  %s1401_s30 = sshra.s32 %s251_s20, 4  ;;  %s1402_s30 = int_to_ptr.hbm [resolvable:$true] %s1401_s30 }
  0x3a   : > { %s1403_s8 = scalar_lea.hbm %s1402_s30, 64  ;;  %s1408_s11 = scalar_lea.hbm %s2137_s1, 256 }
  0x3b   : > { %p1404_p11 = scmp.ne.s32.totalorder %s1402_s30, %s1403_s8  ;;  %p1409_p13 = scmp.lt.s32.totalorder %s1402_s30, %s2137_s1 }
  0x3c   : > { %p1410_p0 = scmp.lt.s32.totalorder %s1408_s11, %s1403_s8 }
  0x3d   : > { %p1406_p9 = pnand %p1404_p11, %p1375_p10 }
  0x3e   : > { %p1411_p5 = por %p1410_p0, %p1409_p13 }
  0x3f   : > { %p1407_p12 = pneg %p1406_p9 }
  0x41   : > { %p1412_p7 = pnand %p1411_p5, %p1407_p12 }
  0x43   : > { %1415 = shalt.err (!%p1412_p7)
}
  0x44   : > { %1244 = dma.hbm_to_vmem [thread:$0]  (!%p1636_p2), %s251_s20, 1024, %s253_s7, %s239_s3, %s1515_s26, %s2161_s16, %s2160_s28  }
  0x45   : > { %264 = sbr.rel (%p1591_p8) target bundleno = 444 (0x1bc), region = 40  ;;  %s1676_s0 = sand.u32 (!%p1591_p8), 1, %s1501_s19  }
  0x46   : > { %s1679_s23 = sshll.u32 (!%p1591_p8), %s1676_s0, 6  ;;  %s267_s9 = scalar_lea.sflag (!%p1591_p8), [#allocation3], %s1676_s0 }
  0x47   : > { %s1683_s12 = scalar_lea.vmem (!%p1591_p8), [#allocation2], %s1679_s23 }
  0x4a   : > { %1476 = dma.done.wait (%p1578_p4), %s267_s9, 1024  }
  0x4b   : > { %1478 = vsyncadd (%p1578_p4), %s267_s9, 4294966272  ;;  %s276_s20 = sand.u32 1, %s1569_s22   ;;  %s1691_s13 = scalar_lea.vmem [#allocation5], %s1679_s23 }
  0x4c   : > { %s277_s29 = scalar_lea.sflag [#allocation6], %s276_s20 }
  0x4d   : > { %1480 = dma.done.wait (%p1578_p4), %s277_s29, 1024  }
  0x4e   : > { %1482 = vsyncadd (%p1578_p4), %s277_s29, 4294966272 }
  0x4f   : > { %1484 = dma.done.wait (%p46_p1), [#allocation6], 1024  }
  0x50   : > { %1486 = vsyncadd (%p46_p1), [#allocation6], 4294966272 }
  0x51   : > { %1488 = dma.done.wait (%p46_p1), [#allocation9], 1024  }
  0x52   : > { %1490 = vsyncadd (%p46_p1), [#allocation9], 4294966272  ;;  %vm342_vm0 = vcmask 523264   ;;  %v1706_v0 = vld [vmem:[%s1683_s12 + $0x8] sm:$0xff]  ;;  %v1709_v1 = vld [vmem:[%s1683_s12] sm:$0xff]  ;;  %s2084_s28 = scalar_lea.vmem [#allocation10], %s1679_s23 }
  0x53   : > { %v346_v2 = vsel %vm342_vm0, %v1706_v0, 0.0  ;;  %v343_v3 = vsel %vm342_vm0, %v1709_v1, 0.0  ;;  %v400_v4 = vmul.f32 %v1706_v0, %v1706_v0  ;;  %v1718_v5 = vld [vmem:[%s1691_s13 + $0x8] sm:$0xff]  ;;  %v1722_v7 = vld [vmem:[%s1691_s13] sm:$0xff]  ;;  %v399_v12 = vmul.f32 %v1709_v1, %v1709_v1  ;;  %v1734_v13 = vld [vmem:[%s1683_s12 + $0x18] sm:$0xff]  ;;  %s1216_s16 = sshll.u32 %s1569_s22, 6 }
  0x54   : > { %347 = vadd.xlane.f32.xlu0 %v346_v2  ;;  %344 = vadd.xlane.f32.xlu2 %v343_v3  ;;  %v432_v8 = vmul.f32 %v1718_v5, %v1718_v5  ;;  %v370_v9 = vsel %vm342_vm0, %v1718_v5, 0.0  ;;  %v367_v10 = vsel %vm342_vm0, %v1722_v7, 0.0  ;;  %v1737_v14 = vld [vmem:[%s1691_s13 + $0x18] sm:$0xff]  ;;  %v352_v15 = vsel %vm342_vm0, %v1734_v13, 0.0  ;;  %v1754_v24 = vld [vmem:[%s1683_s12 + $0x10] sm:$0xff]  ;;  %v1757_v25 = vld [vmem:[%s1683_s12 + $0x28] sm:$0xff]  ;;  %s1046_s2 = scalar_lea.hbm %s2141_s5, %s1216_s16 }
  0x55   : > { %v410_v6 = vsel %vm342_vm0, %v400_v4, 0.0  ;;  %v407_v16 = vsel %vm342_vm0, %v399_v12, 0.0  ;;  %v376_v17 = vsel %vm342_vm0, %v1737_v14, 0.0  ;;  %v431_v18 = vmul.f32 %v1722_v7, %v1722_v7  ;;  %v1760_v26 = vld [vmem:[%s1691_s13 + $0x10] sm:$0xff]  ;;  %v1771_v31 = vld [vmem:[%s1691_s13 + $0x28] sm:$0xff]  ;;  %v1782_v37 = vld [vmem:[%s1683_s12 + $0x20] sm:$0xff] }
  0x56   : > { %411 = vadd.xlane.f32.xlu1 %v410_v6  ;;  %v442_v11 = vsel %vm342_vm0, %v432_v8, 0.0  ;;  %v434_v19 = vmul.f32 %v1737_v14, %v1737_v14  ;;  %v402_v20 = vmul.f32 %v1734_v13, %v1734_v13  ;;  %v349_v27 = vsel %vm342_vm0, %v1754_v24, 0.0  ;;  %v1791_v42 = vld [vmem:[%s1691_s13 + $0x20] sm:$0xff]  ;;  %v1794_v43 = vld [vmem:[%s1691_s13 + $0x38] sm:$0xff]  ;;  %v1817_v55 = vld [vmem:[%s1691_s13 + $0x30] sm:$0xff]  ;;  %s1047_s3 = sshll.u32 %s2084_s28, 4  ;;  %s1048_s3 = int_to_ptr.vmem [resolvable:$true] %s1047_s3 }
  0x57   : > { %v439_v21 = vsel %vm342_vm0, %v431_v18, 0.0  ;;  %v358_v28 = vsel %vm342_vm0, %v1757_v25, 0.0  ;;  %v373_v29 = vsel %vm342_vm0, %v1760_v26, 0.0  ;;  %v433_v30 = vmul.f32 %v1760_v26, %v1760_v26  ;;  %v1797_v44 = vld [vmem:[%s1683_s12 + $0x38] sm:$0xff]  ;;  %v1820_v56 = vld [vmem:[%s1683_s12 + $0x30] sm:$0xff]  ;;  %v1847_v8 = vld [vmem:[#allocation8 + $0x28] sm:$0xff] }
  0x58   : > { %v448_v22 = vsel %vm342_vm0, %v434_v19, 0.0  ;;  %v416_v23 = vsel %vm342_vm0, %v402_v20, 0.0  ;;  %v401_v32 = vmul.f32 %v1754_v24, %v1754_v24  ;;  %v382_v33 = vsel %vm342_vm0, %v1771_v31, 0.0  ;;  %v1833_v2 = vld [vmem:[#allocation8 + $0x38] sm:$0xff]  ;;  %v1839_v4 = vld [vmem:[#allocation8 + $0x30] sm:$0xff]  ;;  %s1049_s30 = sshll.u32 %s1046_s2, 4  ;;  %s1050_s30 = int_to_ptr.hbm [resolvable:$true] %s1049_s30 }
  0x59   : > { %v445_v34 = vsel %vm342_vm0, %v433_v30, 0.0  ;;  %v404_v36 = vmul.f32 %v1757_v25, %v1757_v25  ;;  %v436_v38 = vmul.f32 %v1771_v31, %v1771_v31  ;;  %v355_v40 = vsel %vm342_vm0, %v1782_v37, 0.0  ;;  %v1835_v3 = vld [vmem:[#allocation7 + $0x38] sm:$0xff]  ;;  %702 = vmatpush.msra.mxu2 %v1833_v2  ;;  %v1841_v6 = vld [vmem:[#allocation7 + $0x30] sm:$0xff]  ;;  %651 = vmatpush.msra.mxu0 %v1833_v2  ;;  %s1035_s22 = scalar_lea.sflag [#allocation4], %s1676_s0  ;;  %s1445_s8 = sshra.s32 %s1050_s30, 4  ;;  %s1446_s8 = int_to_ptr.hbm [resolvable:$true] %s1445_s8 }
  0x5a   : > { %v413_v35 = vsel %vm342_vm0, %v401_v32, 0.0  ;;  %v379_v45 = vsel %vm342_vm0, %v1791_v42, 0.0  ;;  %v388_v46 = vsel %vm342_vm0, %v1794_v43, 0.0  ;;  %v364_v47 = vsel %vm342_vm0, %v1797_v44, 0.0  ;;  %725 = vmatpush.msra.mxu3 %v1835_v3  ;;  %674 = vmatpush.msra.mxu1 %v1835_v3  ;;  %v1871_v19 = vld [vmem:[#allocation8 + $0x10] sm:$0xff]  ;;  %s1447_s15 = scalar_lea.hbm %s1446_s8, 64  ;;  %p1452_p2 = scmp.lt.s32.totalorder %s1446_s8, %s2141_s5 }
  0x5b   : > { %v422_v39 = vsel %vm342_vm0, %v404_v36, 0.0  ;;  %v454_v41 = vsel %vm342_vm0, %v436_v38, 0.0  ;;  %v403_v48 = vmul.f32 %v1782_v37, %v1782_v37  ;;  %v406_v49 = vmul.f32 %v1797_v44, %v1797_v44  ;;  %703 = vmatpush.msra.mxu2 %v1839_v4  ;;  %652 = vmatpush.msra.mxu0 %v1839_v4  ;;  %v1873_v20 = vld [vmem:[#allocation7 + $0x10] sm:$0xff]  ;;  %p1448_p1 = scmp.ne.s32.totalorder %s1446_s8, %s1447_s15  ;;  %s1451_s27 = scalar_lea.hbm %s2141_s5, 128 }
  0x5c   : > { %371 = vadd.xlane.f32.xlu0 %v370_v9  ;;  %368 = vadd.xlane.f32.xlu2 %v367_v10  ;;  %v435_v50 = vmul.f32 %v1791_v42, %v1791_v42  ;;  %v438_v54 = vmul.f32 %v1794_v43, %v1794_v43  ;;  %v385_v58 = vsel %vm342_vm0, %v1817_v55, 0.0  ;;  %v361_v59 = vsel %vm342_vm0, %v1820_v56, 0.0  ;;  %v1849_v9 = vld [vmem:[#allocation7 + $0x28] sm:$0xff]  ;;  %v1855_v10 = vld [vmem:[#allocation8 + $0x20] sm:$0xff]  ;;  %p1453_p10 = scmp.lt.s32.totalorder %s1451_s27, %s1447_s15 }
  0x5d   : > { %v419_v51 = vsel %vm342_vm0, %v403_v48, 0.0  ;;  %v428_v52 = vsel %vm342_vm0, %v406_v49, 0.0  ;;  %v405_v60 = vmul.f32 %v1820_v56, %v1820_v56  ;;  %v437_v61 = vmul.f32 %v1817_v55, %v1817_v55  ;;  %726 = vmatpush.msra.mxu3 %v1841_v6  ;;  %675 = vmatpush.msra.mxu1 %v1841_v6  ;;  %p1449_p4 = pnand %p1448_p1, %p1620_p3 }
  0x5e   : > { %443 = vadd.xlane.f32.xlu1 %v442_v11  ;;  %v451_v53 = vsel %vm342_vm0, %v435_v50, 0.0  ;;  %v460_v57 = vsel %vm342_vm0, %v438_v54, 0.0  ;;  %704 = vmatpush.msra.mxu2 %v1847_v8  ;;  %v1857_v11 = vld [vmem:[#allocation7 + $0x20] sm:$0xff]  ;;  %p1454_p11 = por %p1453_p10, %p1452_p2 }
  0x5f   : > { %v425_v62 = vsel %vm342_vm0, %v405_v60, 0.0  ;;  %v457_v63 = vsel %vm342_vm0, %v437_v61, 0.0  ;;  %727 = vmatpush.msra.mxu3 %v1849_v9  ;;  %653 = vmatpush.msra.mxu0 %v1847_v8  ;;  %p1450_p8 = pneg %p1449_p4 }
  0x60   : > { %676 = vmatpush.msra.mxu1 %v1849_v9  ;;  %705 = vmatpush.msra.mxu2 %v1855_v10 }
  0x61   : > { %728 = vmatpush.msra.mxu3 %v1857_v11  ;;  %654 = vmatpush.msra.mxu0 %v1855_v10  ;;  %p1455_p9 = pnand %p1454_p11, %p1450_p8 }
  0x62   : > { %677 = vmatpush.msra.mxu1 %v1857_v11 }
  0x64   : > { %353 = vadd.xlane.f32.xlu0 %v352_v15  ;;  %408 = vadd.xlane.f32.xlu2 %v407_v16  ;;  %v1863_v16 = vld [vmem:[#allocation8 + $0x18] sm:$0xff] }
  0x65   : > { %706 = vmatpush.msra.mxu2 %v1863_v16  ;;  %655 = vmatpush.msra.mxu0 %v1863_v16 }
  0x66   : > { %377 = vadd.xlane.f32.xlu1 %v376_v17  ;;  %v1865_v17 = vld [vmem:[#allocation7 + $0x18] sm:$0xff] }
  0x67   : > { %729 = vmatpush.msra.mxu3 %v1865_v17  ;;  %678 = vmatpush.msra.mxu1 %v1865_v17 }
  0x68   : > { %707 = vmatpush.msra.mxu2 %v1871_v19  ;;  %656 = vmatpush.msra.mxu0 %v1871_v19 }
  0x69   : > { %730 = vmatpush.msra.mxu3 %v1873_v20  ;;  %679 = vmatpush.msra.mxu1 %v1873_v20 }
  0x6c   : > { %440 = vadd.xlane.f32.xlu0 %v439_v21  ;;  %449 = vadd.xlane.f32.xlu2 %v448_v22  ;;  %v1879_v21 = vld [vmem:[#allocation8 + $0x8] sm:$0xff] }
  0x6d   : > { %v1881_v22 = vld [vmem:[#allocation7 + $0x8] sm:$0xff]  ;;  %708 = vmatpush.msra.mxu2 %v1879_v21  ;;  %657 = vmatpush.msra.mxu0 %v1879_v21 }
  0x6e   : > { %417 = vadd.xlane.f32.xlu1 %v416_v23  ;;  %731 = vmatpush.msra.mxu3 %v1881_v22  ;;  %v1887_v23 = vld [vmem:[#allocation8] sm:$0xff] }
  0x6f   : > { %680 = vmatpush.msra.mxu1 %v1881_v22  ;;  %709 = vmatpush.msra.mxu2 %v1887_v23 }
  0x70   : > { %658 = vmatpush.msra.mxu0 %v1887_v23 }
  0x71   : > { %800 = vmatpush.msrb.mxu2 %v1833_v2 }
  0x72   : > { %751 = vmatpush.msrb.mxu0 %v1833_v2 }
  0x73   : > { %801 = vmatpush.msrb.mxu2 %v1839_v4 }
  0x74   : > { %350 = vadd.xlane.f32.xlu0 %v349_v27  ;;  %359 = vadd.xlane.f32.xlu2 %v358_v28  ;;  %v1889_v27 = vld [vmem:[#allocation7] sm:$0xff] }
  0x75   : > { %732 = vmatpush.msra.mxu3 %v1889_v27  ;;  %681 = vmatpush.msra.mxu1 %v1889_v27 }
  0x76   : > { %374 = vadd.xlane.f32.xlu1 %v373_v29  ;;  %802 = vmatpush.msrb.mxu2 %v1847_v8 }
  0x77   : > { %823 = vmatpush.msrb.mxu3 %v1835_v3  ;;  %774 = vmatpush.msrb.mxu1 %v1835_v3 }
  0x78   : > { %752 = vmatpush.msrb.mxu0 %v1839_v4  ;;  %803 = vmatpush.msrb.mxu2 %v1855_v10 }
  0x79   : > { %824 = vmatpush.msrb.mxu3 %v1841_v6  ;;  %775 = vmatpush.msrb.mxu1 %v1841_v6 }
  0x7a   : > { %753 = vmatpush.msrb.mxu0 %v1847_v8  ;;  %804 = vmatpush.msrb.mxu2 %v1863_v16 }
  0x7b   : > { %825 = vmatpush.msrb.mxu3 %v1849_v9  ;;  %776 = vmatpush.msrb.mxu1 %v1849_v9 }
  0x7c   : > { %383 = vadd.xlane.f32.xlu0 %v382_v33  ;;  %446 = vadd.xlane.f32.xlu2 %v445_v34 }
  0x7d   : > { %826 = vmatpush.msrb.mxu3 %v1857_v11  ;;  %754 = vmatpush.msrb.mxu0 %v1855_v10 }
  0x7e   : > { %414 = vadd.xlane.f32.xlu1 %v413_v35  ;;  %805 = vmatpush.msrb.mxu2 %v1871_v19 }
  0x7f   : > { %827 = vmatpush.msrb.mxu3 %v1865_v17  ;;  %777 = vmatpush.msrb.mxu1 %v1857_v11 }
  0x80   : > { %755 = vmatpush.msrb.mxu0 %v1863_v16  ;;  %806 = vmatpush.msrb.mxu2 %v1879_v21 }
  0x81   : > { %828 = vmatpush.msrb.mxu3 %v1873_v20  ;;  %778 = vmatpush.msrb.mxu1 %v1865_v17 }
  0x82   : > { %756 = vmatpush.msrb.mxu0 %v1871_v19  ;;  %807 = vmatpush.msrb.mxu2 %v1887_v23 }
  0x83   : > { %829 = vmatpush.msrb.mxu3 %v1881_v22  ;;  %779 = vmatpush.msrb.mxu1 %v1873_v20 }
  0x84   : > { %423 = vadd.xlane.f32.xlu0 %v422_v39  ;;  %356 = vadd.xlane.f32.xlu2 %v355_v40 }
  0x85   : > { %830 = vmatpush.msrb.mxu3 %v1889_v27  ;;  %757 = vmatpush.msrb.mxu0 %v1879_v21 }
  0x86   : > { %455 = vadd.xlane.f32.xlu1 %v454_v41  ;;  %780 = vmatpush.msrb.mxu1 %v1881_v22 }
  0x87   : > { %758 = vmatpush.msrb.mxu0 %v1887_v23 }
  0x88   : > { %781 = vmatpush.msrb.mxu1 %v1889_v27 }
  0x8c   : > { %380 = vadd.xlane.f32.xlu0 %v379_v45  ;;  %389 = vadd.xlane.f32.xlu2 %v388_v46 }
  0x8e   : > { %365 = vadd.xlane.f32.xlu1 %v364_v47 }
  0x94   : > { %420 = vadd.xlane.f32.xlu0 %v419_v51  ;;  %429 = vadd.xlane.f32.xlu2 %v428_v52 }
  0x96   : > { %452 = vadd.xlane.f32.xlu1 %v451_v53 }
  0x9c   : > { %461 = vadd.xlane.f32.xlu0 %v460_v57  ;;  %386 = vadd.xlane.f32.xlu2 %v385_v58 }
  0x9e   : > { %362 = vadd.xlane.f32.xlu1 %v361_v59 }
  0xa4   : > { %426 = vadd.xlane.f32.xlu0 %v425_v62 }
  0xa6   : > { %458 = vadd.xlane.f32.xlu1 %v457_v63 }
  0xc7   : > { %v348_v12 = vpop.xlane.xlu0 %347  ;;  %v345_v15 = vpop.xlane.xlu2 %344 }
  0xc9   : > { %v412_v18 = vpop.xlane.xlu1 %411 }
  0xcf   : > { %v372_v28 = vpop.xlane.xlu0 %371  ;;  %v369_v29 = vpop.xlane.xlu2 %368 }
  0xd0   : > { %v392_v30 = vadd.f32 %v372_v28, %v348_v12  ;;  %v391_v46 = vadd.f32 %v369_v29, %v345_v15 }
  0xd1   : > { %v444_v32 = vpop.xlane.xlu1 %443 }
  0xd2   : > { %v1901_v33 = vmul.f32 0.0078125, %v392_v30  ;;  %v464_v34 = vadd.f32 %v444_v32, %v412_v18  ;;  %v1928_v48 = vmul.f32 0.0078125, %v391_v46 }
  0xd4   : > { %v480_v35 = vmul.f32 0.0078125, %v464_v34  ;;  %v488_v36 = vmul.f32 %v1901_v33, %v1901_v33  ;;  %v487_v59 = vmul.f32 %v1928_v48, %v1928_v48 }
  0xd6   : > { %v496_v38 = vsub.f32 %v480_v35, %v488_v36 }
  0xd7   : > { %v354_v39 = vpop.xlane.xlu0 %353  ;;  %v409_v40 = vpop.xlane.xlu2 %408 }
  0xd8   : > { %v504_v41 = vadd.f32 1e-05, %v496_v38  ;;  %v592_v38 = vsub.f32 %v1706_v0, %v1901_v33 }
  0xd9   : > { %v378_v45 = vpop.xlane.xlu1 %377 }
  0xda   : > { %1295 = vrsqrt.f32 %v504_v41  ;;  %v394_v47 = vadd.f32 %v378_v45, %v354_v39  ;;  %vm527_vm2 = vweird.f32 %v504_v41  ;;  %v608_v39 = vsub.f32 %v1718_v5, %v1901_v33 }
  0xdc   : > { %v1932_v51 = vmul.f32 0.0078125, %v394_v47 }
  0xde   : > { %v490_v63 = vmul.f32 %v1932_v51, %v1932_v51 }
  0xdf   : > { %v441_v49 = vpop.xlane.xlu0 %440  ;;  %v450_v50 = vpop.xlane.xlu2 %449 }
  0xe0   : > { %v463_v52 = vadd.f32 %v441_v49, %v409_v40  ;;  %v1296_v53 = vpop.eup %1295 }
  0xe1   : > { %v418_v54 = vpop.xlane.xlu1 %417  ;;  %v522_v57 = vmul.f32 %v1296_v53, %v504_v41  ;;  %vm528_vm1 = vweird.f32 %v1296_v53 }
  0xe2   : > { %v479_v58 = vmul.f32 0.0078125, %v463_v52  ;;  %v466_v60 = vadd.f32 %v450_v50, %v418_v54  ;;  %vm529_vm3 = vmor %vm527_vm2, %vm528_vm1 }
  0xe3   : > { %v523_v61 = vmul.f32 %v1296_v53, %v522_v57 }
  0xe4   : > { %v495_v62 = vsub.f32 %v479_v58, %v487_v59  ;;  %v482_v12 = vmul.f32 0.0078125, %v466_v60 }
  0xe5   : > { %v524_v15 = vmul.f32 0.5, %v523_v61 }
  0xe6   : > { %v503_v18 = vadd.f32 1e-05, %v495_v62  ;;  %v498_v28 = vsub.f32 %v482_v12, %v490_v63 }
  0xe7   : > { %v351_v29 = vpop.xlane.xlu0 %350  ;;  %v360_v30 = vpop.xlane.xlu2 %359  ;;  %v525_v32 = vsub.f32 1.5, %v524_v15 }
  0xe8   : > { %1297 = vrsqrt.f32 %v503_v18  ;;  %v506_v34 = vadd.f32 1e-05, %v498_v28  ;;  %vm517_vm5 = vweird.f32 %v503_v18 }
  0xe9   : > { %v375_v35 = vpop.xlane.xlu1 %374  ;;  %v526_v36 = vmul.f32 %v1296_v53, %v525_v32 }
  0xea   : > { %1299 = vrsqrt.f32 %v506_v34  ;;  %v393_v40 = vadd.f32 %v375_v35, %v351_v29  ;;  %v591_v35 = vsub.f32 %v1709_v1, %v1928_v48  ;;  %vm547_vm8 = vweird.f32 %v506_v34 }
  0xeb   : > { %v530_v45 = vsel %vm529_vm3, %v1296_v53, %v526_v36  ;;  %v607_v36 = vsub.f32 %v1722_v7, %v1928_v48  ;;  %v610_v1 = vsub.f32 %v1737_v14, %v1932_v51 }
  0xec   : > { %v616_v46 = vmul.f32 %v608_v39, %v530_v45  ;;  %v600_v47 = vmul.f32 %v592_v38, %v530_v45  ;;  %v1947_v57 = vmul.f32 0.0078125, %v393_v40 }
  0xee   : > { %v1298_v49 = vpop.eup %1297  ;;  %1187 = vmatmul.msk.f32.vlgmr.msra.gmra.mxu2 %vm342_vm0, %v616_v46  ;;  %1188 = vmatmul.msk.f32.vlgmr.msra.gmra.mxu3 %vm342_vm0, %v600_v47  ;;  %v489_v61 = vmul.f32 %v1947_v57, %v1947_v57 }
  0xef   : > { %v512_v50 = vmul.f32 %v1298_v49, %v503_v18  ;;  %v384_v41 = vpop.xlane.xlu0 %383  ;;  %v447_v52 = vpop.xlane.xlu2 %446  ;;  %898 = vmatpush.msra.mxu2 %v1833_v2  ;;  %921 = vmatpush.msra.mxu3 %v1835_v3  ;;  %vm518_vm4 = vweird.f32 %v1298_v49  ;;  %v594_v18 = vsub.f32 %v1734_v13, %v1932_v51 }
  0xf0   : > { %v1300_v54 = vpop.eup %1299  ;;  %v396_v60 = vadd.f32 %v384_v41, %v360_v30  ;;  %vm519_vm7 = vmor %vm517_vm5, %vm518_vm4 }
  0xf1   : > { %v513_v0 = vmul.f32 %v1298_v49, %v512_v50  ;;  %v542_v5 = vmul.f32 %v1300_v54, %v506_v34  ;;  %v415_v33 = vpop.xlane.xlu1 %414  ;;  %899 = vmatpush.msra.mxu2 %v1839_v4  ;;  %922 = vmatpush.msra.mxu3 %v1841_v6  ;;  %vm548_vm6 = vweird.f32 %v1300_v54 }
  0xf2   : > { %v465_v53 = vadd.f32 %v447_v52, %v415_v33  ;;  %v1963_v38 = vmul.f32 0.0078125, %v396_v60  ;;  %vm549_vm9 = vmor %vm547_vm8, %vm548_vm6 }
  0xf3   : > { %v514_v58 = vmul.f32 0.5, %v513_v0  ;;  %v543_v59 = vmul.f32 %v1300_v54, %v542_v5  ;;  %900 = vmatpush.msra.mxu2 %v1847_v8  ;;  %923 = vmatpush.msra.mxu3 %v1849_v9 }
  0xf4   : > { %v481_v62 = vmul.f32 0.0078125, %v465_v53  ;;  %v492_v34 = vmul.f32 %v1963_v38, %v1963_v38 }
  0xf5   : > { %v515_v63 = vsub.f32 1.5, %v514_v58  ;;  %v544_v12 = vmul.f32 0.5, %v543_v59  ;;  %901 = vmatpush.msra.mxu2 %v1855_v10  ;;  %924 = vmatpush.msra.mxu3 %v1857_v11 }
  0xf6   : > { %v497_v15 = vsub.f32 %v481_v62, %v489_v61 }
  0xf7   : > { %v545_v28 = vsub.f32 1.5, %v544_v12  ;;  %v424_v29 = vpop.xlane.xlu0 %423  ;;  %v357_v30 = vpop.xlane.xlu2 %356  ;;  %v516_v32 = vmul.f32 %v1298_v49, %v515_v63  ;;  %902 = vmatpush.msra.mxu2 %v1863_v16  ;;  %925 = vmatpush.msra.mxu3 %v1865_v17 }
  0xf8   : > { %v1965_v39 = vadd.f32 1e-05, %v497_v15  ;;  %v593_v15 = vsub.f32 %v1754_v24, %v1947_v57 }
  0xf9   : > { %v456_v40 = vpop.xlane.xlu1 %455  ;;  %v520_v45 = vsel %vm519_vm7, %v1298_v49, %v516_v32  ;;  %v546_v46 = vmul.f32 %v1300_v54, %v545_v28  ;;  %903 = vmatpush.msra.mxu2 %v1871_v19  ;;  %926 = vmatpush.msra.mxu3 %v1873_v20  ;;  %v609_v32 = vsub.f32 %v1760_v26, %v1947_v57 }
  0xfa   : > { %1301 = vrsqrt.f32 %v1965_v39  ;;  %v468_v7 = vadd.f32 %v456_v40, %v424_v29  ;;  %v615_v48 = vmul.f32 %v607_v36, %v520_v45  ;;  %v599_v47 = vmul.f32 %v591_v35, %v520_v45 }
  0xfb   : > { %v550_v50 = vsel %vm549_vm9, %v1300_v54, %v546_v46  ;;  %904 = vmatpush.msra.mxu2 %v1879_v21  ;;  %927 = vmatpush.msra.mxu3 %v1881_v22  ;;  %vm537_vm11 = vweird.f32 %v1965_v39 }
  0xfc   : > { %v484_v13 = vmul.f32 0.0078125, %v468_v7  ;;  %1185 = vmatmul.msk.f32.vlgmr.msra.gmra.mxu0 %vm342_vm0, %v615_v48  ;;  %v618_v49 = vmul.f32 %v610_v1, %v550_v50  ;;  %v602_v14 = vmul.f32 %v594_v18, %v550_v50  ;;  %1186 = vmatmul.msk.f32.vlgmr.msra.gmra.mxu1 %vm342_vm0, %v599_v47 }
  0xfd   : > { %905 = vmatpush.msra.mxu2 %v1887_v23  ;;  %928 = vmatpush.msra.mxu3 %v1889_v27 }
  0xfe   : > { %v500_v51 = vsub.f32 %v484_v13, %v492_v34  ;;  %1193 = vmatmul.msk.f32.vlgmr.msrb.gmra.mxu2 %vm342_vm0, %v618_v49  ;;  %1194 = vmatmul.msk.f32.vlgmr.msrb.gmra.mxu3 %vm342_vm0, %v602_v14  ;;  %v596_v34 = vsub.f32 %v1757_v25, %v1963_v38 }
  0xff   : > { %v381_v41 = vpop.xlane.xlu0 %380  ;;  %v390_v52 = vpop.xlane.xlu2 %389  ;;  %849 = vmatpush.msra.mxu0 %v1833_v2  ;;  %872 = vmatpush.msra.mxu1 %v1835_v3 }
 0x100   : > { %v1302_v54 = vpop.eup %1301  ;;  %v1987_v0 = vadd.f32 1e-05, %v500_v51  ;;  %996 = vmatpush.msrb.mxu2 %v1833_v2  ;;  %1019 = vmatpush.msrb.mxu3 %v1835_v3  ;;  %v395_v58 = vadd.f32 %v381_v41, %v357_v30  ;;  %v612_v51 = vsub.f32 %v1771_v31, %v1963_v38 }
 0x101   : > { %v532_v5 = vmul.f32 %v1302_v54, %v1965_v39  ;;  %v366_v33 = vpop.xlane.xlu1 %365  ;;  %850 = vmatpush.msra.mxu0 %v1839_v4  ;;  %873 = vmatpush.msra.mxu1 %v1841_v6  ;;  %vm538_vm10 = vweird.f32 %v1302_v54 }
 0x102   : > { %1303 = vrsqrt.f32 %v1987_v0  ;;  %997 = vmatpush.msrb.mxu2 %v1839_v4  ;;  %1020 = vmatpush.msrb.mxu3 %v1841_v6  ;;  %v2007_v12 = vmul.f32 0.0078125, %v395_v58  ;;  %vm539_vm12 = vmor %vm537_vm11, %vm538_vm10  ;;  %v398_v35 = vadd.f32 %v390_v52, %v366_v33  ;;  %vm567_vm14 = vweird.f32 %v1987_v0 }
 0x103   : > { %v533_v53 = vmul.f32 %v1302_v54, %v532_v5  ;;  %851 = vmatpush.msra.mxu0 %v1847_v8  ;;  %874 = vmatpush.msra.mxu1 %v1849_v9 }
 0x104   : > { %998 = vmatpush.msrb.mxu2 %v1847_v8  ;;  %1021 = vmatpush.msrb.mxu3 %v1849_v9  ;;  %v491_v40 = vmul.f32 %v2007_v12, %v2007_v12  ;;  %v2030_v46 = vmul.f32 0.0078125, %v398_v35 }
 0x105   : > { %v534_v59 = vmul.f32 0.5, %v533_v53  ;;  %852 = vmatpush.msra.mxu0 %v1855_v10  ;;  %875 = vmatpush.msra.mxu1 %v1857_v11 }
 0x106   : > { %999 = vmatpush.msrb.mxu2 %v1855_v10  ;;  %1022 = vmatpush.msrb.mxu3 %v1857_v11 }
 0x107   : > { %v535_v60 = vsub.f32 1.5, %v534_v59  ;;  %v421_v61 = vpop.xlane.xlu0 %420  ;;  %v430_v62 = vpop.xlane.xlu2 %429  ;;  %853 = vmatpush.msra.mxu0 %v1863_v16  ;;  %876 = vmatpush.msra.mxu1 %v1865_v17 }
 0x108   : > { %v1304_v63 = vpop.eup %1303  ;;  %1000 = vmatpush.msrb.mxu2 %v1863_v16  ;;  %1023 = vmatpush.msrb.mxu3 %v1865_v17 }
 0x109   : > { %v562_v28 = vmul.f32 %v1304_v63, %v1987_v0  ;;  %v453_v29 = vpop.xlane.xlu1 %452  ;;  %v536_v30 = vmul.f32 %v1302_v54, %v535_v60  ;;  %854 = vmatpush.msra.mxu0 %v1871_v19  ;;  %877 = vmatpush.msra.mxu1 %v1873_v20  ;;  %vm568_vm13 = vweird.f32 %v1304_v63 }
 0x10a   : > { %v467_v36 = vadd.f32 %v453_v29, %v421_v61  ;;  %1001 = vmatpush.msrb.mxu2 %v1871_v19  ;;  %1024 = vmatpush.msrb.mxu3 %v1873_v20  ;;  %vm569_vm15 = vmor %vm567_vm14, %vm568_vm13  ;;  %v595_v61 = vsub.f32 %v1782_v37, %v2007_v12  ;;  %v598_v37 = vsub.f32 %v1797_v44, %v2030_v46 }
 0x10b   : > { %v563_v24 = vmul.f32 %v1304_v63, %v562_v28  ;;  %v540_v39 = vsel %vm539_vm12, %v1302_v54, %v536_v30  ;;  %855 = vmatpush.msra.mxu0 %v1879_v21  ;;  %878 = vmatpush.msra.mxu1 %v1881_v22 }
 0x10c   : > { %v483_v18 = vmul.f32 0.0078125, %v467_v36  ;;  %v617_v45 = vmul.f32 %v609_v32, %v540_v39  ;;  %v601_v26 = vmul.f32 %v593_v15, %v540_v39  ;;  %1002 = vmatpush.msrb.mxu2 %v1879_v21  ;;  %1025 = vmatpush.msrb.mxu3 %v1881_v22 }
 0x10d   : > { %v564_v57 = vmul.f32 0.5, %v563_v24  ;;  %856 = vmatpush.msra.mxu0 %v1887_v23  ;;  %879 = vmatpush.msra.mxu1 %v1889_v27 }
 0x10e   : > { %v499_v1 = vsub.f32 %v483_v18, %v491_v40  ;;  %1190 = vmatmul.msk.f32.vlgmr.msrb.gmra.mxu0 %vm342_vm0, %v617_v45  ;;  %1191 = vmatmul.msk.f32.vlgmr.msrb.gmra.mxu1 %vm342_vm0, %v601_v26  ;;  %v1294_v26 = vld [vmem:[%s2140_s4] ss:$0 sm:$0xff] }
 0x10f   : > { %v565_v7 = vsub.f32 1.5, %v564_v57  ;;  %v462_v48 = vpop.xlane.xlu0 %461  ;;  %v387_v13 = vpop.xlane.xlu2 %386  ;;  %947 = vmatpush.msrb.mxu0 %v1833_v2  ;;  %970 = vmatpush.msrb.mxu1 %v1835_v3  ;;  %v494_v3 = vmul.f32 %v2030_v46, %v2030_v46 }
 0x110   : > { %v507_v47 = vadd.f32 1e-05, %v499_v1  ;;  %v470_v50 = vadd.f32 %v462_v48, %v430_v62  ;;  %1003 = vmatpush.msrb.mxu2 %v1887_v23  ;;  %1026 = vmatpush.msrb.mxu3 %v1889_v27 }
 0x111   : > { %v566_v49 = vmul.f32 %v1304_v63, %v565_v7  ;;  %v363_v14 = vpop.xlane.xlu1 %362  ;;  %948 = vmatpush.msrb.mxu0 %v1839_v4  ;;  %971 = vmatpush.msrb.mxu1 %v1841_v6 }
 0x112   : > { %1305 = vrsqrt.f32 %v507_v47  ;;  %v486_v2 = vmul.f32 0.0078125, %v470_v50  ;;  %v397_v41 = vadd.f32 %v387_v13, %v363_v14  ;;  %vm557_vm2 = vweird.f32 %v507_v47 }
 0x113   : > { %v570_v25 = vsel %vm569_vm15, %v1304_v63, %v566_v49  ;;  %949 = vmatpush.msrb.mxu0 %v1847_v8  ;;  %972 = vmatpush.msrb.mxu1 %v1849_v9 }
 0x114   : > { %v502_v52 = vsub.f32 %v486_v2, %v494_v3  ;;  %v620_v54 = vmul.f32 %v612_v51, %v570_v25  ;;  %v604_v0 = vmul.f32 %v596_v34, %v570_v25  ;;  %v477_v6 = vmul.f32 0.0078125, %v397_v41 }
 0x115   : > { %950 = vmatpush.msrb.mxu0 %v1855_v10  ;;  %973 = vmatpush.msrb.mxu1 %v1857_v11 }
 0x116   : > { %v510_v31 = vadd.f32 1e-05, %v502_v52  ;;  %1199 = vmatmul.msk.f32.vlgmr.msra.gmra.mxu2 %vm342_vm0, %v620_v54  ;;  %1200 = vmatmul.msk.f32.vlgmr.msra.gmra.mxu3 %vm342_vm0, %v604_v0  ;;  %v493_v58 = vmul.f32 %v477_v6, %v477_v6  ;;  %v597_v44 = vsub.f32 %v1820_v56, %v477_v6 }
 0x117   : > { %v427_v38 = vpop.xlane.xlu0 %426  ;;  %951 = vmatpush.msrb.mxu0 %v1863_v16  ;;  %974 = vmatpush.msrb.mxu1 %v1865_v17 }
 0x118   : > { %v1306_v4 = vpop.eup %1305  ;;  %1307 = vrsqrt.f32 %v510_v31  ;;  %vm587_vm5 = vweird.f32 %v510_v31 }
 0x119   : > { %v552_v5 = vmul.f32 %v1306_v4, %v507_v47  ;;  %v459_v33 = vpop.xlane.xlu1 %458  ;;  %952 = vmatpush.msrb.mxu0 %v1871_v19  ;;  %975 = vmatpush.msrb.mxu1 %v1873_v20  ;;  %vm558_vm1 = vweird.f32 %v1306_v4 }
 0x11a   : > { %v469_v8 = vadd.f32 %v459_v33, %v427_v38  ;;  %vm559_vm3 = vmor %vm557_vm2, %vm558_vm1 }
 0x11b   : > { %v553_v9 = vmul.f32 %v1306_v4, %v552_v5  ;;  %953 = vmatpush.msrb.mxu0 %v1879_v21  ;;  %976 = vmatpush.msrb.mxu1 %v1881_v22  ;;  %v611_v21 = vsub.f32 %v1791_v42, %v2007_v12  ;;  %v614_v42 = vsub.f32 %v1794_v43, %v2030_v46 }
 0x11c   : > { %v485_v53 = vmul.f32 0.0078125, %v469_v8  ;;  %v613_v43 = vsub.f32 %v1817_v55, %v477_v6 }
 0x11d   : > { %v554_v10 = vmul.f32 0.5, %v553_v9  ;;  %954 = vmatpush.msrb.mxu0 %v1887_v23  ;;  %977 = vmatpush.msrb.mxu1 %v1889_v27 }
 0x11e   : > { %v1308_v11 = vpop.eup %1307  ;;  %v501_v59 = vsub.f32 %v485_v53, %v493_v58 }
 0x11f   : > { %v555_v60 = vsub.f32 1.5, %v554_v10  ;;  %v582_v16 = vmul.f32 %v1308_v11, %v510_v31  ;;  %vm588_vm4 = vweird.f32 %v1308_v11 }
 0x120   : > { %v509_v17 = vadd.f32 1e-05, %v501_v59  ;;  %vm589_vm6 = vmor %vm587_vm5, %vm588_vm4 }
 0x121   : > { %v556_v19 = vmul.f32 %v1306_v4, %v555_v60  ;;  %v583_v20 = vmul.f32 %v1308_v11, %v582_v16 }
 0x122   : > { %1309 = vrsqrt.f32 %v509_v17  ;;  %vm577_vm8 = vweird.f32 %v509_v17 }
 0x123   : > { %v560_v22 = vsel %vm559_vm3, %v1306_v4, %v556_v19  ;;  %v584_v62 = vmul.f32 0.5, %v583_v20 }
 0x124   : > { %v619_v63 = vmul.f32 %v611_v21, %v560_v22  ;;  %v603_v15 = vmul.f32 %v595_v61, %v560_v22 }
 0x125   : > { %v585_v28 = vsub.f32 1.5, %v584_v62 }
 0x126   : > { %1196 = vmatmul.msk.f32.vlgmr.msra.gmra.mxu0 %vm342_vm0, %v619_v63  ;;  %1197 = vmatmul.msk.f32.vlgmr.msra.gmra.mxu1 %vm342_vm0, %v603_v15 }
 0x127   : > { %v586_v23 = vmul.f32 %v1308_v11, %v585_v28 }
 0x128   : > { %v1310_v27 = vpop.eup %1309 }
 0x129   : > { %v590_v12 = vsel %vm589_vm6, %v1308_v11, %v586_v23  ;;  %v572_v29 = vmul.f32 %v1310_v27, %v509_v17  ;;  %vm578_vm7 = vweird.f32 %v1310_v27 }
 0x12a   : > { %v622_v30 = vmul.f32 %v614_v42, %v590_v12  ;;  %v606_v32 = vmul.f32 %v598_v37, %v590_v12  ;;  %vm579_vm9 = vmor %vm577_vm8, %vm578_vm7 }
 0x12b   : > { %v573_v35 = vmul.f32 %v1310_v27, %v572_v29 }
 0x12c   : > { %1205 = vmatmul.msk.f32.vlgmr.msrb.gmra.mxu2 %vm342_vm0, %v622_v30  ;;  %1206 = vmatmul.msk.f32.vlgmr.msrb.gmra.mxu3 %vm342_vm0, %v606_v32 }
 0x12d   : > { %v574_v36 = vmul.f32 0.5, %v573_v35 }
 0x12f   : > { %v575_v24 = vsub.f32 1.5, %v574_v36 }
 0x131   : > { %v576_v39 = vmul.f32 %v1310_v27, %v575_v24 }
 0x133   : > { %v580_v18 = vsel %vm579_vm9, %v1310_v27, %v576_v39 }
 0x134   : > { %v621_v40 = vmul.f32 %v613_v43, %v580_v18  ;;  %v605_v45 = vmul.f32 %v597_v44, %v580_v18 }
 0x136   : > { %1202 = vmatmul.msk.f32.vlgmr.msrb.gmra.mxu0 %vm342_vm0, %v621_v40  ;;  %1203 = vmatmul.msk.f32.vlgmr.msrb.gmra.mxu1 %vm342_vm0, %v605_v45 }
 0x171   : > { %v711_v57 = vpop.f32.mrf.mxu2  ;;  %v734_v46 = vpop.f32.mrf.mxu3 }
 0x172   : > { %v735_v1 = vadd.f32 %v734_v46, %v711_v57 }
 0x174   : > { %v737_v7 = vadd.f32 %v1294_v26, %v735_v1 }
 0x176   : > { %1189 = vst.msk [vmem:[%s2084_s28 + $0x8] sm:$0xff] %vm342_vm0, %v737_v7 }
 0x179   : > { %v660_v55 = vpop.f32.mrf.mxu0  ;;  %v683_v56 = vpop.f32.mrf.mxu1 }
 0x17a   : > { %v684_v48 = vadd.f32 %v683_v56, %v660_v55 }
 0x17c   : > { %v689_v47 = vadd.f32 %v1294_v26, %v684_v48 }
 0x17e   : > { %690 = vst.msk [vmem:[%s2084_s28] sm:$0xff] %vm342_vm0, %v689_v47 }
 0x181   : > { %v809_v50 = vpop.f32.mrf.mxu2  ;;  %v832_v13 = vpop.f32.mrf.mxu3 }
 0x182   : > { %v833_v34 = vadd.f32 %v832_v13, %v809_v50 }
 0x184   : > { %v835_v49 = vadd.f32 %v1294_v26, %v833_v34 }
 0x186   : > { %1195 = vst.msk [vmem:[%s2084_s28 + $0x18] sm:$0xff] %vm342_vm0, %v835_v49 }
 0x18b   : > { %v760_v14 = vpop.f32.mrf.mxu0  ;;  %v783_v51 = vpop.f32.mrf.mxu1 }
 0x18c   : > { %v784_v2 = vadd.f32 %v783_v51, %v760_v14 }
 0x18e   : > { %v786_v3 = vadd.f32 %v1294_v26, %v784_v2 }
 0x190   : > { %1192 = vst.msk [vmem:[%s2084_s28 + $0x10] sm:$0xff] %vm342_vm0, %v786_v3 }
 0x199   : > { %v907_v25 = vpop.f32.mrf.mxu2  ;;  %v930_v41 = vpop.f32.mrf.mxu3 }
 0x19a   : > { %v931_v52 = vadd.f32 %v930_v41, %v907_v25 }
 0x19c   : > { %v933_v54 = vadd.f32 %v1294_v26, %v931_v52 }
 0x19e   : > { %1201 = vst.msk [vmem:[%s2084_s28 + $0x28] sm:$0xff] %vm342_vm0, %v933_v54 }
 0x1a3   : > { %v858_v0 = vpop.f32.mrf.mxu0  ;;  %v881_v31 = vpop.f32.mrf.mxu1 }
 0x1a4   : > { %v882_v38 = vadd.f32 %v881_v31, %v858_v0 }
 0x1a6   : > { %v884_v4 = vadd.f32 %v1294_v26, %v882_v38 }
 0x1a8   : > { %1198 = vst.msk [vmem:[%s2084_s28 + $0x20] sm:$0xff] %vm342_vm0, %v884_v4 }
 0x1af   : > { %v1005_v6 = vpop.f32.mrf.mxu2  ;;  %v1028_v5 = vpop.f32.mrf.mxu3 }
 0x1b0   : > { %v1029_v33 = vadd.f32 %v1028_v5, %v1005_v6 }
 0x1b2   : > { %v1031_v8 = vadd.f32 %v1294_v26, %v1029_v33 }
 0x1b3   : > { %v956_v9 = vpop.f32.mrf.mxu0  ;;  %v979_v53 = vpop.f32.mrf.mxu1 }
 0x1b4   : > { %1207 = vst.msk [vmem:[%s2084_s28 + $0x38] sm:$0xff] %vm342_vm0, %v1031_v8  ;;  %v980_v58 = vadd.f32 %v979_v53, %v956_v9 }
 0x1b6   : > { %v982_v10 = vadd.f32 %v1294_v26, %v980_v58 }
 0x1b8   : > { %1204 = vst.msk [vmem:[%s2084_s28 + $0x30] sm:$0xff] %vm342_vm0, %v982_v10 }
 0x1b9   : > { %1458 = shalt.err (!%p1455_p9)
}
 0x1ba   : > { %s1516_s0 = smov 128   ;;  %s1517_s12 = smov 8  }
 0x1bb   : > { %1229 = dma.vmem_to_hbm [thread:$0]  (%p1620_p3), %s1048_s3, 1024, %s1050_s30, %s1035_s22, %s1516_s0, %s1516_s0, %s1517_s12  }
 0x1bc PF: > { %s1064_s20 = sand.u32 1, %s1497_s18   ;;  %p2162_p12 = scmp.ge.s32.totalorder %s1509_s21, 2 }
 0x1bd   : > { %s1065_s29 = scalar_lea.sflag [#allocation4], %s1064_s20 }
 0x1be   : > { %p1246_p13 = pnand %p2162_p12, %p1583_p6 }
 0x1c0   : > { %p1247_p0 = pneg %p1246_p13 }
 0x1c2   : > { %1492 = dma.done.wait (%p1247_p0), %s1065_s29, 1024  }
 0x1c3   : > { %1494 = vsyncadd (%p1247_p0), %s1065_s29, 4294966272  ;;  %s2163_s13 = sld [smem:[#allocation16_spill]]  ;;  %p22_p5 = scmp.ge.s32.totalorder %s1610_s14, 4  }
 0x1c4   : > { %s2164_s20 = sld [smem:[#allocation17_spill]]  ;;  %s2165_s18 = smov %s1501_s19 }
 0x1c5   : > { %s2167_s21 = smov %s1610_s14  ;;  %24 = sbr.rel (!%p22_p5) target bundleno = 12 (0xc), region = 113 }
 0x1c9   : > { %s2166_s19 = smov %s2163_s13 }
 0x1ca   :  { %1071 = vsyncpa [#allocation3], 1 }
 0x1cb   :  { %1073 = vsyncpa [#allocation3 + $0x1], 1 }
 0x1cc   :  { %1074 = vsyncpa [#allocation6], 1 }
 0x1cd   :  { %1076 = vsyncpa [#allocation6 + $0x1], 1 }
 0x1ce   :  { %1077 = vsyncpa [#allocation9], 1 }
 0x1cf   :  { %1078 = vsyncpa [#allocation4], 1 }
 0x1d0   :  { %1080 = vsyncpa [#allocation4 + $0x1], 1 }

</bundles_post_ra>
